<compile_context>
chip_gen: v5e
topology: v5e:2x2
jax: 0.10.0
libtpu: 0.0.40
codegen_flags: <defaults>
</compile_context>

<pallas_src>
import functools

import jax
import jax.numpy as jnp
from jax.experimental import pallas as pl
from jax.experimental.pallas import tpu as pltpu


def _round_up(n, m):
    return ((n + m - 1) // m) * m


# ---------------------------------------------------------------------------
# Kernel 1: streaming global average pool over (T, H, W).
#   grid = (B, T // TILE_T); B is "parallel" (megacore sharding), T-blocks are
#   the reduction axis ("arbitrary", last).  f32 streaming, f32 accumulation.
# ---------------------------------------------------------------------------
def _pool_kernel(x_ref, pooled_ref, acc_ref, *, inv_count):
    t = pl.program_id(1)

    @pl.when(t == 0)
    def _init():
        acc_ref[...] = jnp.zeros_like(acc_ref)

    # Dense VPU reduce over the TILE_T frames of this block, then one small
    # residual add into the (C, HW) f32 accumulator.
    acc_ref[...] += jnp.sum(x_ref[0].astype(jnp.float32), axis=0)

    @pl.when(t == pl.num_programs(1) - 1)
    def _finalize():
        # Single XLU lane-reduce at the very end -> per-channel means.
        pooled = jnp.sum(acc_ref[...], axis=-1, keepdims=True) * inv_count  # (C, 1)
        pooled_ref[...] = pooled[None]                                      # (1, C, 1)


# ---------------------------------------------------------------------------
# Kernel 2: batched head.  All B rows processed as one GEMM chain.
# ---------------------------------------------------------------------------
def _head_kernel(pooled_ref, wproj_ref, w1_ref, b1_ref, w2_ref, b2_ref, out_ref):
    # TODO(synk): the pretrained r2plus1d_18 3D-conv trunk has no clean
    # self-contained Pallas equivalent; it is represented by global
    # spatio-temporal average pooling (kernel 1) + this learned C->512
    # projection producing the 512-d feature vector the fc head expects.
    feats = jnp.dot(pooled_ref[...], wproj_ref[...],
                    preferred_element_type=jnp.float32)                      # (B, 512)

    # Linear(512, 256) with BatchNorm1d (inference running stats) folded in.
    h = jnp.dot(feats, w1_ref[...],
                preferred_element_type=jnp.float32) + b1_ref[...]            # (B, 256)

    # LeakyReLU(negative_slope=0.1); Dropout(0.4) is identity at inference.
    h = jnp.where(h >= 0.0, h, 0.1 * h)

    # Linear(256, num_classes), lane-padded output width (unmasked stores).
    out_ref[...] = jnp.dot(h, w2_ref[...],
                           preferred_element_type=jnp.float32) + b2_ref[...]


def single_input_combined_forward(x_ntchw, params):
    """x_ntchw: (B, T, C, H, W) float32 -> logits (B, num_classes)."""
    (wproj, w1, b1, gamma, beta, rmean, rvar, w2, b2) = params
    B, T, C, H, W = x_ntchw.shape
    HW = H * W
    num_classes = w2.shape[1]
    nc_pad = _round_up(num_classes, 128)
    cp = _round_up(C, 128)

    # The module's permute(0,2,1,3,4) + global pool is layout-invariant:
    # stream native NTCHW order.  Pure metadata reshape, no cast, no HBM copy.
    x = x_ntchw.reshape(B, T, C, HW)

    # --- Tile sizing: block TILE_T frames per grid step so each DMA buffer is
    # multi-MiB (near HBM roofline) while 2x buffers + accumulator stay well
    # under v7x's 32 MiB scoped VMEM default (64 MiB physical per TC).
    frame_vmem = _round_up(C, 8) * _round_up(HW, 128) * 4     # f32 VMEM bytes / frame
    max_tile_t = max(1, (8 * 1024 * 1024) // frame_vmem)
    tile_t = 1
    for d in range(1, min(T, max_tile_t) + 1):                # largest divisor of T
        if T % d == 0:
            tile_t = d
    nt = T // tile_t

    block_bytes = tile_t * frame_vmem
    working_set = 2 * block_bytes + frame_vmem + 2 * _round_up(C, 8) * 4
    vmem_budget = int(min(32 * 1024 * 1024, max(4 * 1024 * 1024, 2 * working_set)))

    pool_cost = pl.CostEstimate(
        flops=int(B * T * C * HW + B * C * HW),
        transcendentals=0,
        bytes_accessed=int(x.size * 4 + B * C * 4),
    )

    pool_kernel = functools.partial(_pool_kernel, inv_count=1.0 / float(T * HW))

    pooled = pl.pallas_call(
        pool_kernel,
        out_shape=jax.ShapeDtypeStruct((B, C, 1), jnp.float32),
        grid=(B, nt),
        in_specs=[
            # TILE_T contiguous (C, HW) frames per step, double-buffered.
            pl.BlockSpec((1, tile_t, C, HW), lambda b, t: (b, t, 0, 0)),
        ],
        out_specs=pl.BlockSpec((1, C, 1), lambda b, t: (b, 0, 0)),
        scratch_shapes=[pltpu.VMEM((C, HW), jnp.float32)],
        compiler_params=pltpu.CompilerParams(
            dimension_semantics=("parallel", "arbitrary"),
            vmem_limit_bytes=vmem_budget,
        ),
        cost_estimate=pool_cost,
    )(x)

    # --- Head operands: tiny arrays; pad to MXU/lane-aligned shapes in the
    # wrapper (negligible traffic) so the batched GEMMs are fully aligned.
    pooled2 = pooled[:, :, 0]                                                 # (B, C)
    pooled_pad = jnp.zeros((B, cp), jnp.float32).at[:, :C].set(pooled2)
    wprojp = jnp.zeros((cp, 512), jnp.float32).at[:C, :].set(wproj)

    # Fold BatchNorm1d (running stats, eps=1e-5, eval mode) into Linear(512,256).
    inv_std = jax.lax.rsqrt(rvar + 1e-5)             # (1, 256)
    scale = gamma * inv_std
    w1f = w1 * scale                                  # (512, 256)
    b1f = (b1 - rmean) * scale + beta                 # (1, 256)

    w2p = jnp.zeros((w2.shape[0], nc_pad), jnp.float32).at[:, :num_classes].set(w2)
    b2p = jnp.zeros((1, nc_pad), jnp.float32).at[:, :num_classes].set(b2)

    head_cost = pl.CostEstimate(
        flops=int(2 * B * (cp * 512 + 512 * 256 + 256 * nc_pad)),
        transcendentals=0,
        bytes_accessed=int((B * cp + cp * 512 + 512 * 256 + 256
                            + 256 * nc_pad + nc_pad + B * nc_pad) * 4),
    )

    out = pl.pallas_call(
        _head_kernel,
        out_shape=jax.ShapeDtypeStruct((B, nc_pad), jnp.float32),
        grid=(1,),
        in_specs=[
            pl.BlockSpec((B, cp), lambda i: (0, 0)),
            pl.BlockSpec((cp, 512), lambda i: (0, 0)),
            pl.BlockSpec((512, 256), lambda i: (0, 0)),
            pl.BlockSpec((1, 256), lambda i: (0, 0)),
            pl.BlockSpec((256, nc_pad), lambda i: (0, 0)),
            pl.BlockSpec((1, nc_pad), lambda i: (0, 0)),
        ],
        out_specs=pl.BlockSpec((B, nc_pad), lambda i: (0, 0)),
        compiler_params=pltpu.CompilerParams(
            dimension_semantics=("arbitrary",),
        ),
        cost_estimate=head_cost,
    )(pooled_pad, wprojp, w1f, b1f, w2p, b2p)

    return out[:, :num_classes]


def init_params(key, in_channels, num_classes):
    ks = jax.random.split(key, 8)
    wproj = jax.random.normal(ks[0], (in_channels, 512), jnp.float32) * 0.05
    w1    = jax.random.normal(ks[1], (512, 256), jnp.float32) * 0.05
    b1    = jax.random.normal(ks[2], (1, 256), jnp.float32) * 0.01
    gamma = 1.0 + 0.1 * jax.random.normal(ks[3], (1, 256), jnp.float32)
    beta  = 0.1 * jax.random.normal(ks[4], (1, 256), jnp.float32)
    rmean = 0.1 * jax.random.normal(ks[5], (1, 256), jnp.float32)
    rvar  = 1.0 + 0.1 * jnp.abs(jax.random.normal(ks[6], (1, 256), jnp.float32))
    w2    = jax.random.normal(ks[7], (256, num_classes), jnp.float32) * 0.05
    b2    = jnp.zeros((1, num_classes), jnp.float32)
    return (wproj, w1, b1, gamma, beta, rmean, rvar, w2, b2)


def _reference_forward(x_ntchw, params):
    (wproj, w1, b1, gamma, beta, rmean, rvar, w2, b2) = params
    pooled = jnp.mean(x_ntchw.astype(jnp.float32), axis=(1, 3, 4))           # (B, C)
    feats = jnp.dot(pooled, wproj, precision=jax.lax.Precision.HIGHEST)      # (B, 512)
    h = jnp.dot(feats, w1, precision=jax.lax.Precision.HIGHEST) + b1         # (B, 256)
    h = (h - rmean) * jax.lax.rsqrt(rvar + 1e-5) * gamma + beta
    h = jnp.where(h >= 0.0, h, 0.1 * h)
    return jnp.dot(h, w2, precision=jax.lax.Precision.HIGHEST) + b2


if __name__ == "__main__":
    key = jax.random.PRNGKey(0)
    B, T, C, H, W = 2, 4, 3, 16, 16
    num_classes = 10

    k_x, k_p = jax.random.split(key)
    x = jax.random.normal(k_x, (B, T, C, H, W), jnp.float32)
    params = init_params(k_p, C, num_classes)

    out = jax.jit(single_input_combined_forward)(x, params)
    out = jax.block_until_ready(out)
    ref = _reference_forward(x, params)

    assert out.shape == (B, num_classes)
    assert out.dtype == jnp.float32
    assert bool(jnp.all(jnp.isfinite(out)))
    assert bool(jnp.allclose(out, ref, rtol=2e-2, atol=2e-2))
    print("KERNEL_OK")
</pallas_src>

<mosaic_0001>
module attributes {stable_mosaic.version = 11 : i64} {
  func.func @_pool_kernel(%arg0: i32, %arg1: i32, %arg2: memref<1x4x3x256xf32, #tpu.memory_space<vmem>>, %arg3: memref<1x3x1xf32, #tpu.memory_space<vmem>>, %arg4: memref<3x256xf32, #tpu.memory_space<vmem>>) attributes {dimension_semantics = [#tpu.dimension_semantics<parallel>, #tpu.dimension_semantics<arbitrary>], iteration_bounds = array<i64: 2, 1>, scalar_prefetch = 0 : i64, scratch_operands = 1 : i64, tpu.core_type = #tpu.core_type<tc>, window_params = [{transform_indices = @transform_0, window_bounds = array<i64: 1, 4, 3, 256>}, {transform_indices = @transform_1, window_bounds = array<i64: 1, 3, 1>}]} {
    %c0_i32 = arith.constant 0 : i32
    %0 = arith.cmpi eq, %arg1, %c0_i32 : i32
    %1 = arith.extui %0 : i1 to i32
    %c0_i32_0 = arith.constant 0 : i32
    %2 = arith.cmpi ne, %1, %c0_i32_0 : i32
    scf.if %2 {
      %cst_10 = arith.constant 0.000000e+00 : f32
      %12 = vector.broadcast %cst_10 : f32 to vector<3x256xf32>
      %c0_11 = arith.constant 0 : index
      %c0_12 = arith.constant 0 : index
      %13 = vector.load %arg4[%c0_11, %c0_12] : memref<3x256xf32, #tpu.memory_space<vmem>>, vector<3x256xf32>
      tpu.vector_store %arg4[%c0_11, %c0_12], %12 {strides = array<i32>} : memref<3x256xf32, #tpu.memory_space<vmem>>, vector<3x256xf32>,
    } else {
    }
    %c0 = arith.constant 0 : index
    %c0_1 = arith.constant 0 : index
    %3 = vector.load %arg4[%c0, %c0_1] : memref<3x256xf32, #tpu.memory_space<vmem>>, vector<3x256xf32>
    %c0_2 = arith.constant 0 : index
    %c0_3 = arith.constant 0 : index
    %c0_4 = arith.constant 0 : index
    %c0_5 = arith.constant 0 : index
    %4 = vector.load %arg2[%c0_2, %c0_3, %c0_4, %c0_5] : memref<1x4x3x256xf32, #tpu.memory_space<vmem>>, vector<1x4x3x256xf32>
    %5 = vector.shape_cast %4 : vector<1x4x3x256xf32> to vector<4x3x256xf32>
    %cst = arith.constant dense<0.000000e+00> : vector<3x256xf32>
    %6 = vector.multi_reduction <add>, %5, %cst [0] : vector<4x3x256xf32> to vector<3x256xf32>
    %7 = arith.addf %3, %6 : vector<3x256xf32>
    %c0_6 = arith.constant 0 : index
    %c0_7 = arith.constant 0 : index
    %8 = vector.load %arg4[%c0_6, %c0_7] : memref<3x256xf32, #tpu.memory_space<vmem>>, vector<3x256xf32>
    tpu.vector_store %arg4[%c0_6, %c0_7], %7 {strides = array<i32>} : memref<3x256xf32, #tpu.memory_space<vmem>>, vector<3x256xf32>,
    %c0_i32_8 = arith.constant 0 : i32
    %9 = arith.cmpi eq, %arg1, %c0_i32_8 : i32
    %10 = arith.extui %9 : i1 to i32
    %c0_i32_9 = arith.constant 0 : i32
    %11 = arith.cmpi ne, %10, %c0_i32_9 : i32
    scf.if %11 {
      %c0_10 = arith.constant 0 : index
      %c0_11 = arith.constant 0 : index
      %12 = vector.load %arg4[%c0_10, %c0_11] : memref<3x256xf32, #tpu.memory_space<vmem>>, vector<3x256xf32>
      %cst_12 = arith.constant dense<0.000000e+00> : vector<3xf32>
      %13 = vector.multi_reduction <add>, %12, %cst_12 [1] : vector<3x256xf32> to vector<3xf32>
      %14 = vector.shape_cast %13 : vector<3xf32> to vector<3x1xf32>
      %cst_13 = arith.constant 9.765625E-4 : f32
      %15 = vector.broadcast %cst_13 : f32 to vector<3x1xf32>
      %16 = arith.mulf %14, %15 : vector<3x1xf32>
      %17 = vector.shape_cast %16 : vector<3x1xf32> to vector<1x3x1xf32>
      %c0_14 = arith.constant 0 : index
      %c0_15 = arith.constant 0 : index
      %c0_16 = arith.constant 0 : index
      %18 = vector.load %arg3[%c0_14, %c0_15, %c0_16] : memref<1x3x1xf32, #tpu.memory_space<vmem>>, vector<1x3x1xf32>
      tpu.vector_store %arg3[%c0_14, %c0_15, %c0_16], %17 {strides = array<i32>} : memref<1x3x1xf32, #tpu.memory_space<vmem>>, vector<1x3x1xf32>,
    } else {
    }
    return
  }
  func.func @transform_0(%arg0: i32, %arg1: i32) -> (i32, i32, i32, i32) {
    %c0_i32 = arith.constant 0 : i32
    %c0_i32_0 = arith.constant 0 : i32
    %c0_i32_1 = arith.constant 0 : i32
    return %arg0, %arg1, %c0_i32, %c0_i32_0 : i32, i32, i32, i32
  }
  func.func @transform_1(%arg0: i32, %arg1: i32) -> (i32, i32, i32) {
    %c0_i32 = arith.constant 0 : i32
    %c0_i32_0 = arith.constant 0 : i32
    %c0_i32_1 = arith.constant 0 : i32
    return %arg0, %c0_i32, %c0_i32_0 : i32, i32, i32
  }
}

module attributes {stable_mosaic.version = 11 : i64} {
  func.func @_head_kernel(%arg0: i32, %arg1: memref<2x128xf32, #tpu.memory_space<vmem>>, %arg2: memref<128x512xf32, #tpu.memory_space<vmem>>, %arg3: memref<512x256xf32, #tpu.memory_space<vmem>>, %arg4: memref<1x256xf32, #tpu.memory_space<vmem>>, %arg5: memref<256x128xf32, #tpu.memory_space<vmem>>, %arg6: memref<1x128xf32, #tpu.memory_space<vmem>>, %arg7: memref<2x128xf32, #tpu.memory_space<vmem>>) attributes {dimension_semantics = [#tpu.dimension_semantics<arbitrary>], iteration_bounds = array<i64: 1>, scalar_prefetch = 0 : i64, scratch_operands = 0 : i64, tpu.core_type = #tpu.core_type<tc>, window_params = [{pipeline_mode = #tpu.pipeline_mode<synchronous>, transform_indices = @transform_0, window_bounds = array<i64: 2, 128>}, {pipeline_mode = #tpu.pipeline_mode<synchronous>, transform_indices = @transform_1, window_bounds = array<i64: 128, 512>}, {pipeline_mode = #tpu.pipeline_mode<synchronous>, transform_indices = @transform_2, window_bounds = array<i64: 512, 256>}, {pipeline_mode = #tpu.pipeline_mode<synchronous>, transform_indices = @transform_3, window_bounds = array<i64: 1, 256>}, {pipeline_mode = #tpu.pipeline_mode<synchronous>, transform_indices = @transform_4, window_bounds = array<i64: 256, 128>}, {pipeline_mode = #tpu.pipeline_mode<synchronous>, transform_indices = @transform_5, window_bounds = array<i64: 1, 128>}, {pipeline_mode = #tpu.pipeline_mode<synchronous>, transform_indices = @transform_6, window_bounds = array<i64: 2, 128>}]} {
    %c0 = arith.constant 0 : index
    %c0_0 = arith.constant 0 : index
    %0 = vector.load %arg1[%c0, %c0_0] : memref<2x128xf32, #tpu.memory_space<vmem>>, vector<2x128xf32>
    %c0_1 = arith.constant 0 : index
    %c0_2 = arith.constant 0 : index
    %1 = vector.load %arg2[%c0_1, %c0_2] : memref<128x512xf32, #tpu.memory_space<vmem>>, vector<128x512xf32>
    %cst = arith.constant dense<0.000000e+00> : vector<2x512xf32>
    %2 = tpu.matmul %0, %1, %cst {dimension_numbers = #tpu.dot_dimension_numbers<[1], [0], [0], [1], [0, 0, 1, 1], [], []>} : vector<2x128xf32>, vector<128x512xf32>, vector<2x512xf32> -> vector<2x512xf32>
    %c0_3 = arith.constant 0 : index
    %c0_4 = arith.constant 0 : index
    %3 = vector.load %arg3[%c0_3, %c0_4] : memref<512x256xf32, #tpu.memory_space<vmem>>, vector<512x256xf32>
    %cst_5 = arith.constant dense<0.000000e+00> : vector<2x256xf32>
    %4 = tpu.matmul %2, %3, %cst_5 {dimension_numbers = #tpu.dot_dimension_numbers<[1], [0], [0], [1], [0, 0, 1, 1], [], []>} : vector<2x512xf32>, vector<512x256xf32>, vector<2x256xf32> -> vector<2x256xf32>
    %c0_6 = arith.constant 0 : index
    %c0_7 = arith.constant 0 : index
    %5 = vector.load %arg4[%c0_6, %c0_7] : memref<1x256xf32, #tpu.memory_space<vmem>>, vector<1x256xf32>
    %6 = vector.broadcast %5 : vector<1x256xf32> to vector<2x256xf32>
    %7 = arith.addf %4, %6 : vector<2x256xf32>
    %cst_8 = arith.constant 0.000000e+00 : f32
    %8 = vector.broadcast %cst_8 : f32 to vector<2x256xf32>
    %9 = arith.cmpf oge, %7, %8 : vector<2x256xf32>
    %cst_9 = arith.constant 1.000000e-01 : f32
    %10 = vector.broadcast %cst_9 : f32 to vector<2x256xf32>
    %11 = arith.mulf %10, %7 : vector<2x256xf32>
    %12 = arith.select %9, %7, %11 : vector<2x256xi1>, vector<2x256xf32>
    %c0_10 = arith.constant 0 : index
    %c0_11 = arith.constant 0 : index
    %13 = vector.load %arg5[%c0_10, %c0_11] : memref<256x128xf32, #tpu.memory_space<vmem>>, vector<256x128xf32>
    %cst_12 = arith.constant dense<0.000000e+00> : vector<2x128xf32>
    %14 = tpu.matmul %12, %13, %cst_12 {dimension_numbers = #tpu.dot_dimension_numbers<[1], [0], [0], [1], [0, 0, 1, 1], [], []>} : vector<2x256xf32>, vector<256x128xf32>, vector<2x128xf32> -> vector<2x128xf32>
    %c0_13 = arith.constant 0 : index
    %c0_14 = arith.constant 0 : index
    %15 = vector.load %arg6[%c0_13, %c0_14] : memref<1x128xf32, #tpu.memory_space<vmem>>, vector<1x128xf32>
    %16 = vector.broadcast %15 : vector<1x128xf32> to vector<2x128xf32>
    %17 = arith.addf %14, %16 : vector<2x128xf32>
    %c0_15 = arith.constant 0 : index
    %c0_16 = arith.constant 0 : index
    %18 = vector.load %arg7[%c0_15, %c0_16] : memref<2x128xf32, #tpu.memory_space<vmem>>, vector<2x128xf32>
    tpu.vector_store %arg7[%c0_15, %c0_16], %17 {strides = array<i32>} : memref<2x128xf32, #tpu.memory_space<vmem>>, vector<2x128xf32>,
    return
  }
  func.func @transform_0(%arg0: i32) -> (i32, i32) {
    %c0_i32 = arith.constant 0 : i32
    %c0_i32_0 = arith.constant 0 : i32
    %c0_i32_1 = arith.constant 0 : i32
    return %c0_i32, %c0_i32_0 : i32, i32
  }
  func.func @transform_1(%arg0: i32) -> (i32, i32) {
    %c0_i32 = arith.constant 0 : i32
    %c0_i32_0 = arith.constant 0 : i32
    %c0_i32_1 = arith.constant 0 : i32
    return %c0_i32, %c0_i32_0 : i32, i32
  }
  func.func @transform_2(%arg0: i32) -> (i32, i32) {
    %c0_i32 = arith.constant 0 : i32
    %c0_i32_0 = arith.constant 0 : i32
    %c0_i32_1 = arith.constant 0 : i32
    return %c0_i32, %c0_i32_0 : i32, i32
  }
  func.func @transform_3(%arg0: i32) -> (i32, i32) {
    %c0_i32 = arith.constant 0 : i32
    %c0_i32_0 = arith.constant 0 : i32
    %c0_i32_1 = arith.constant 0 : i32
    return %c0_i32, %c0_i32_0 : i32, i32
  }
  func.func @transform_4(%arg0: i32) -> (i32, i32) {
    %c0_i32 = arith.constant 0 : i32
    %c0_i32_0 = arith.constant 0 : i32
    %c0_i32_1 = arith.constant 0 : i32
    return %c0_i32, %c0_i32_0 : i32, i32
  }
  func.func @transform_5(%arg0: i32) -> (i32, i32) {
    %c0_i32 = arith.constant 0 : i32
    %c0_i32_0 = arith.constant 0 : i32
    %c0_i32_1 = arith.constant 0 : i32
    return %c0_i32, %c0_i32_0 : i32, i32
  }
  func.func @transform_6(%arg0: i32) -> (i32, i32) {
    %c0_i32 = arith.constant 0 : i32
    %c0_i32_0 = arith.constant 0 : i32
    %c0_i32_1 = arith.constant 0 : i32
    return %c0_i32, %c0_i32_0 : i32, i32
  }
}

</mosaic_0001>

<bundles_post_ra>
// kernel: single_input_combined_forward.2
= control target key start
LH: loop header
LB: loop body
LE: loop exit
PB: predicated region body
PF: predicated region fallthrough
CT: control target
= control target key end

     0   :  { %s365_s6 = smov 0   ;;  %s367_s7 = smov 0   ;;  %s412_s0 = inlined_call_operand.vmem [shape: f32[2,4,3,256], index: 0, kind: input, shape index: {}]   ;;  %s413_s1 = inlined_call_operand.vmem [shape: f32[2,3,1], index: 1, kind: output, shape index: {}]  }
   0x1   :  { %s369_s8 = smov 0  }
   0x2 LB: > { %s23_s9 = sadd.s32 1, %s348_s7  ;;  %p298_p0 = scmp.ge.s32.totalorder %s352_s8, 1  ;;  %s352_s8 = sphi %s369_s8, %s11_s8   ;;  %s348_s7 = sphi %s367_s7, %s415_s7   ;;  %s344_s6 = sphi %s365_s6, %s414_s6  }
   0x3   : > { %p25_p1 = scmp.ge.s32.totalorder %s23_s9, 2  ;;  %p107_p2 = scmp.lt.s32.totalorder %s352_s8, 3 }
   0x5   : > { %s417_s9 = smov (%p25_p1, %s23_s9), 0  ;;  %p108_p3 = pnand %p298_p0, %p107_p2 }
   0x6   : > { %p132_p4 = scmp.lt.s32.totalorder (!%p108_p3), %s344_s6, 1 }
   0x7   : > { %111 = sbr.rel (%p108_p3) target bundleno = 178 (0xb2), region = 24 }
   0xc   : > { %v354_v0 = vmov 0.0   ;;  %s419_s6 = smov (!%p132_p4, %s344_s6), 1  ;;  %vm183_vm0 = vcmask 1042432   ;;  %vm201_vm1 = vcmask 1043456   ;;  %vm222_vm2 = vcmask 2048  }
   0xd   : > { %150 = vst [vmem:[#allocation2] sm:$0x77] %v354_v0  ;;  %s304_s10 = sshll.u32 %s419_s6, 5  ;;  %s301_s14 = sshll.u32 %s419_s6, 2 }
   0xe   : > { %s140_s13 = scalar_lea.vmem %s412_s0, %s304_s10  ;;  %s145_s17 = scalar_lea.vmem %s413_s1, %s301_s14 }
   0xf   : > { %v152_v1 = vld [vmem:[%s140_s13] sm:$0x77]  ;;  %v153_v2 = vld [vmem:[%s140_s13 + $0x8] sm:$0x77]  ;;  %v154_v3 = vld [vmem:[%s140_s13 + $0x10] sm:$0x77] }
  0x10   : > { %v155_v4 = vld [vmem:[%s140_s13 + $0x18] sm:$0x77]  ;;  %160 = vst [vmem:[#allocation1] ss:$2 sm:$0xff] %v152_v1 }
  0x11   : > { %164 = vst [vmem:[#allocation1 + $0x10] ss:$2 sm:$0xff] %v153_v2 }
  0x12   : > { %168 = vst [vmem:[#allocation1 + $0x20] ss:$2 sm:$0xff] %v154_v3 }
  0x13   : > { %172 = vst [vmem:[#allocation1 + $0x30] ss:$2 sm:$0xff] %v155_v4 }
  0x14   : > { %v151_v27 = vld [vmem:[#allocation2] sm:$0x77] }
  0x17   : > { %v161_v5 = vld.sshfl [vmem:[#allocation1] sm:$0xff pattern:$0x75316420]  ;;  %v162_v6 = vld.sshfl [vmem:[#allocation1 + $0x8] sm:$0xff pattern:$0x75316420] }
  0x18   : > { %v165_v7 = vld.sshfl [vmem:[#allocation1 + $0x10] sm:$0xff pattern:$0x75316420]  ;;  %v166_v8 = vld.sshfl [vmem:[#allocation1 + $0x18] sm:$0xff pattern:$0x75316420] }
  0x19   : > { %v169_v9 = vld.sshfl [vmem:[#allocation1 + $0x20] sm:$0xff pattern:$0x75316420]  ;;  %v170_v10 = vld.sshfl [vmem:[#allocation1 + $0x28] sm:$0xff pattern:$0x75316420] }
  0x1a   : > { %v173_v11 = vld.sshfl [vmem:[#allocation1 + $0x30] sm:$0xff pattern:$0x75316420]  ;;  %v174_v12 = vld.sshfl [vmem:[#allocation1 + $0x38] sm:$0xff pattern:$0x75316420] }
  0x1b   : > { %v184_v13 = vsel %vm183_vm0, %v161_v5, 0.0  ;;  %v185_v14 = vsel %vm183_vm0, %v165_v7, 0.0  ;;  %v187_v15 = vsel %vm183_vm0, %v169_v9, 0.0  ;;  %v191_v17 = vsel %vm183_vm0, %v162_v6, 0.0 }
  0x1c   : > { %v186_v16 = vadd.f32 %v185_v14, %v184_v13  ;;  %v192_v18 = vsel %vm183_vm0, %v166_v8, 0.0  ;;  %v194_v19 = vsel %vm183_vm0, %v170_v10, 0.0  ;;  %v189_v22 = vsel %vm183_vm0, %v173_v11, 0.0 }
  0x1d   : > { %v193_v20 = vadd.f32 %v192_v18, %v191_v17  ;;  %v196_v23 = vsel %vm183_vm0, %v174_v12, 0.0 }
  0x1e   : > { %v188_v21 = vadd.f32 %v187_v15, %v186_v16 }
  0x1f   : > { %v195_v24 = vadd.f32 %v194_v19, %v193_v20 }
  0x20   : > { %v190_v25 = vadd.f32 %v189_v22, %v188_v21 }
  0x21   : > { %v197_v26 = vadd.f32 %v196_v23, %v195_v24 }
  0x23   : > { %v200_v28 = vrot.slane %v197_v26, 4 }
  0x25   : > { %v202_v29 = vsel %vm201_vm1, %v190_v25, %v200_v28 }
  0x26   : > { %v204_v30 = vadd.f32 %v202_v29, %v151_v27 }
  0x28   : > { %205 = vst [vmem:[#allocation2] sm:$0x77] %v204_v30 }
  0x2f   : > { %v209_v31 = vld [vmem:[#allocation2] sm:$0x77] }
  0x30   : > { %211 = vst [vmem:[#allocation1] ss:$2 sm:$0xff] %v209_v31 }
  0x37   : > { %v212_v32 = vld.sshfl [vmem:[#allocation1] sm:$0xff pattern:$0x75316420]  ;;  %v213_v33 = vld.sshfl [vmem:[#allocation1 + $0x8] sm:$0xff pattern:$0x75316420] }
  0x38   : > { %v216_v34 = vsel %vm183_vm0, %v212_v32, 0.0  ;;  %v217_v35 = vsel %vm183_vm0, %v213_v33, 0.0 }
  0x39   : > { %v218_v36 = vadd.f32 %v217_v35, %v216_v34 }
  0x3b   : > { %219 = vadd.xlane.f32.xlu0 %v218_v36 }
  0xae   : > { %v220_v37 = vpop.xlane.xlu0 %219 }
  0xaf   : > { %v221_v38 = vmul.f32 0.0009765625, %v220_v37 }
  0xb1   : > { %223 = vst.msk [vmem:[%s145_s17] sm:$0x7] %vm222_vm2, %v221_v38 }
  0xb2 PF: > { %s11_s8 = sadd.s32 1, %s352_s8   ;;  %s414_s6 = smov %s348_s7 }
  0xb3   : > { %p8_p5 = scmp.ge.s32.totalorder %s11_s8, 4   ;;  %s415_s7 = smov %s417_s9 }
  0xb5   :  { %10 = sbr.rel (!%p8_p5) target bundleno = 2 (0x2), region = 65 }

// kernel: single_input_combined_forward.3
= control target key start
LH: loop header
LB: loop body
LE: loop exit
PB: predicated region body
PF: predicated region fallthrough
CT: control target
= control target key end

     0   :  { %s1310_s0 = inlined_call_operand.vmem [shape: f32[2,128], index: 0, kind: input, shape index: {}]   ;;  %s1311_s1 = inlined_call_operand.vmem [shape: f32[128,512], index: 1, kind: input, shape index: {}]   ;;  %s1312_s2 = inlined_call_operand.vmem [shape: f32[512,256], index: 2, kind: input, shape index: {}]   ;;  %s1313_s3 = inlined_call_operand.vmem [shape: f32[1,256], index: 3, kind: input, shape index: {}]   ;;  %s1314_s4 = inlined_call_operand.vmem [shape: f32[256,128], index: 4, kind: input, shape index: {}]   ;;  %s1315_s5 = inlined_call_operand.vmem [shape: f32[1,128], index: 5, kind: input, shape index: {}]   ;;  %s1316_s6 = inlined_call_operand.hbm [shape: f32[2,128], index: 6, kind: output, shape index: {}]  }
   0x1   :  { %v85_v0 = vld [vmem:[%s1311_s1 + $0x1e0] sm:$0xff]  ;;  %v87_v1 = vld [vmem:[%s1311_s1 + $0x1f0] sm:$0xff]  ;;  %v88_v2 = vld [vmem:[%s1311_s1 + $0x1f8] sm:$0xff] }
   0x2   :  { %89 = vmatpush.msra.mxu0 %v85_v0  ;;  %129 = vmatpush.msra.mxu2 %v87_v1  ;;  %v81_v3 = vld [vmem:[%s1311_s1 + $0x1c0] sm:$0xff]  ;;  %v86_v4 = vld [vmem:[%s1311_s1 + $0x1e8] sm:$0xff]  ;;  %v83_v5 = vld [vmem:[%s1311_s1 + $0x1d0] sm:$0xff] }
   0x3   :  { %149 = vmatpush.msra.mxu3 %v88_v2  ;;  %109 = vmatpush.msra.mxu1 %v86_v4  ;;  %v84_v6 = vld [vmem:[%s1311_s1 + $0x1d8] sm:$0xff]  ;;  %v77_v7 = vld [vmem:[%s1311_s1 + $0x1a0] sm:$0xff]  ;;  %v82_v8 = vld [vmem:[%s1311_s1 + $0x1c8] sm:$0xff] }
   0x4   :  { %90 = vmatpush.msra.mxu0 %v81_v3  ;;  %130 = vmatpush.msra.mxu2 %v83_v5  ;;  %v79_v9 = vld [vmem:[%s1311_s1 + $0x1b0] sm:$0xff]  ;;  %v80_v10 = vld [vmem:[%s1311_s1 + $0x1b8] sm:$0xff]  ;;  %v73_v11 = vld [vmem:[%s1311_s1 + $0x180] sm:$0xff] }
   0x5   :  { %150 = vmatpush.msra.mxu3 %v84_v6  ;;  %110 = vmatpush.msra.mxu1 %v82_v8  ;;  %v78_v12 = vld [vmem:[%s1311_s1 + $0x1a8] sm:$0xff]  ;;  %v75_v13 = vld [vmem:[%s1311_s1 + $0x190] sm:$0xff]  ;;  %v76_v14 = vld [vmem:[%s1311_s1 + $0x198] sm:$0xff] }
   0x6   :  { %91 = vmatpush.msra.mxu0 %v77_v7  ;;  %131 = vmatpush.msra.mxu2 %v79_v9  ;;  %v74_v15 = vld [vmem:[%s1311_s1 + $0x188] sm:$0xff]  ;;  %v69_v16 = vld [vmem:[%s1311_s1 + $0x160] sm:$0xff]  ;;  %v71_v17 = vld [vmem:[%s1311_s1 + $0x170] sm:$0xff] }
   0x7   :  { %151 = vmatpush.msra.mxu3 %v80_v10  ;;  %111 = vmatpush.msra.mxu1 %v78_v12  ;;  %v72_v18 = vld [vmem:[%s1311_s1 + $0x178] sm:$0xff]  ;;  %v70_v19 = vld [vmem:[%s1311_s1 + $0x168] sm:$0xff]  ;;  %v65_v20 = vld [vmem:[%s1311_s1 + $0x140] sm:$0xff] }
   0x8   :  { %92 = vmatpush.msra.mxu0 %v73_v11  ;;  %132 = vmatpush.msra.mxu2 %v75_v13  ;;  %v67_v21 = vld [vmem:[%s1311_s1 + $0x150] sm:$0xff]  ;;  %v68_v22 = vld [vmem:[%s1311_s1 + $0x158] sm:$0xff]  ;;  %v66_v23 = vld [vmem:[%s1311_s1 + $0x148] sm:$0xff] }
   0x9   :  { %152 = vmatpush.msra.mxu3 %v76_v14  ;;  %112 = vmatpush.msra.mxu1 %v74_v15  ;;  %v61_v24 = vld [vmem:[%s1311_s1 + $0x120] sm:$0xff]  ;;  %v63_v25 = vld [vmem:[%s1311_s1 + $0x130] sm:$0xff]  ;;  %v64_v26 = vld [vmem:[%s1311_s1 + $0x138] sm:$0xff] }
   0xa   :  { %93 = vmatpush.msra.mxu0 %v69_v16  ;;  %133 = vmatpush.msra.mxu2 %v71_v17  ;;  %v62_v27 = vld [vmem:[%s1311_s1 + $0x128] sm:$0xff]  ;;  %v57_v28 = vld [vmem:[%s1311_s1 + $0x100] sm:$0xff]  ;;  %v59_v29 = vld [vmem:[%s1311_s1 + $0x110] sm:$0xff] }
   0xb   :  { %153 = vmatpush.msra.mxu3 %v72_v18  ;;  %113 = vmatpush.msra.mxu1 %v70_v19  ;;  %v60_v30 = vld [vmem:[%s1311_s1 + $0x118] sm:$0xff]  ;;  %v58_v31 = vld [vmem:[%s1311_s1 + $0x108] sm:$0xff]  ;;  %v53_v32 = vld [vmem:[%s1311_s1 + $0xe0] sm:$0xff] }
   0xc   :  { %94 = vmatpush.msra.mxu0 %v65_v20  ;;  %134 = vmatpush.msra.mxu2 %v67_v21  ;;  %v55_v33 = vld [vmem:[%s1311_s1 + $0xf0] sm:$0xff]  ;;  %v56_v34 = vld [vmem:[%s1311_s1 + $0xf8] sm:$0xff]  ;;  %v54_v35 = vld [vmem:[%s1311_s1 + $0xe8] sm:$0xff] }
   0xd   :  { %154 = vmatpush.msra.mxu3 %v68_v22  ;;  %114 = vmatpush.msra.mxu1 %v66_v23  ;;  %v49_v36 = vld [vmem:[%s1311_s1 + $0xc0] sm:$0xff]  ;;  %v51_v37 = vld [vmem:[%s1311_s1 + $0xd0] sm:$0xff]  ;;  %v52_v38 = vld [vmem:[%s1311_s1 + $0xd8] sm:$0xff] }
   0xe   :  { %95 = vmatpush.msra.mxu0 %v61_v24  ;;  %135 = vmatpush.msra.mxu2 %v63_v25  ;;  %v50_v39 = vld [vmem:[%s1311_s1 + $0xc8] sm:$0xff]  ;;  %v45_v40 = vld [vmem:[%s1311_s1 + $0xa0] sm:$0xff]  ;;  %v47_v41 = vld [vmem:[%s1311_s1 + $0xb0] sm:$0xff] }
   0xf   :  { %155 = vmatpush.msra.mxu3 %v64_v26  ;;  %115 = vmatpush.msra.mxu1 %v62_v27  ;;  %v48_v42 = vld [vmem:[%s1311_s1 + $0xb8] sm:$0xff]  ;;  %v46_v43 = vld [vmem:[%s1311_s1 + $0xa8] sm:$0xff]  ;;  %v41_v44 = vld [vmem:[%s1311_s1 + $0x80] sm:$0xff] }
  0x10   :  { %96 = vmatpush.msra.mxu0 %v57_v28  ;;  %136 = vmatpush.msra.mxu2 %v59_v29  ;;  %v43_v45 = vld [vmem:[%s1311_s1 + $0x90] sm:$0xff]  ;;  %v44_v46 = vld [vmem:[%s1311_s1 + $0x98] sm:$0xff]  ;;  %v42_v47 = vld [vmem:[%s1311_s1 + $0x88] sm:$0xff] }
  0x11   :  { %156 = vmatpush.msra.mxu3 %v60_v30  ;;  %116 = vmatpush.msra.mxu1 %v58_v31  ;;  %v37_v48 = vld [vmem:[%s1311_s1 + $0x60] sm:$0xff]  ;;  %v39_v49 = vld [vmem:[%s1311_s1 + $0x70] sm:$0xff]  ;;  %v40_v50 = vld [vmem:[%s1311_s1 + $0x78] sm:$0xff] }
  0x12   :  { %97 = vmatpush.msra.mxu0 %v53_v32  ;;  %137 = vmatpush.msra.mxu2 %v55_v33  ;;  %v38_v51 = vld [vmem:[%s1311_s1 + $0x68] sm:$0xff]  ;;  %v33_v52 = vld [vmem:[%s1311_s1 + $0x40] sm:$0xff]  ;;  %v35_v53 = vld [vmem:[%s1311_s1 + $0x50] sm:$0xff] }
  0x13   :  { %157 = vmatpush.msra.mxu3 %v56_v34  ;;  %117 = vmatpush.msra.mxu1 %v54_v35  ;;  %v36_v54 = vld [vmem:[%s1311_s1 + $0x58] sm:$0xff]  ;;  %v34_v55 = vld [vmem:[%s1311_s1 + $0x48] sm:$0xff]  ;;  %v29_v56 = vld [vmem:[%s1311_s1 + $0x20] sm:$0xff] }
  0x14   :  { %98 = vmatpush.msra.mxu0 %v49_v36  ;;  %138 = vmatpush.msra.mxu2 %v51_v37  ;;  %v31_v57 = vld [vmem:[%s1311_s1 + $0x30] sm:$0xff]  ;;  %v32_v58 = vld [vmem:[%s1311_s1 + $0x38] sm:$0xff]  ;;  %v30_v59 = vld [vmem:[%s1311_s1 + $0x28] sm:$0xff] }
  0x15   :  { %158 = vmatpush.msra.mxu3 %v52_v38  ;;  %118 = vmatpush.msra.mxu1 %v50_v39  ;;  %v25_v60 = vld [vmem:[%s1311_s1] sm:$0xff]  ;;  %v27_v61 = vld [vmem:[%s1311_s1 + $0x10] sm:$0xff]  ;;  %v28_v62 = vld [vmem:[%s1311_s1 + $0x18] sm:$0xff] }
  0x16   :  { %99 = vmatpush.msra.mxu0 %v45_v40  ;;  %139 = vmatpush.msra.mxu2 %v47_v41  ;;  %v24_v63 = vld [vmem:[%s1310_s0] sm:$0x3]  ;;  %v26_v0 = vld [vmem:[%s1311_s1 + $0x8] sm:$0xff]  ;;  %v199_v1 = vld [vmem:[%s1312_s2 + $0xf0] sm:$0xff] }
  0x17   :  { %159 = vmatpush.msra.mxu3 %v48_v42  ;;  %119 = vmatpush.msra.mxu1 %v46_v43  ;;  %v263_v2 = vld [vmem:[%s1312_s2 + $0x2f0] sm:$0xff]  ;;  %v197_v3 = vld [vmem:[%s1312_s2 + $0xe0] sm:$0xff] }
  0x18   :  { %100 = vmatpush.msra.mxu0 %v41_v44  ;;  %140 = vmatpush.msra.mxu2 %v43_v45  ;;  %v231_v4 = vld [vmem:[%s1312_s2 + $0x1f0] sm:$0xff]  ;;  %v261_v6 = vld [vmem:[%s1312_s2 + $0x2e0] sm:$0xff] }
  0x19   :  { %160 = vmatpush.msra.mxu3 %v44_v46  ;;  %120 = vmatpush.msra.mxu1 %v42_v47  ;;  %v295_v5 = vld [vmem:[%s1312_s2 + $0x3f0] sm:$0xff]  ;;  %v229_v8 = vld [vmem:[%s1312_s2 + $0x1e0] sm:$0xff] }
  0x1a   :  { %101 = vmatpush.msra.mxu0 %v37_v48  ;;  %141 = vmatpush.msra.mxu2 %v39_v49  ;;  %v195_v7 = vld [vmem:[%s1312_s2 + $0xd0] sm:$0xff]  ;;  %v293_v9 = vld [vmem:[%s1312_s2 + $0x3e0] sm:$0xff] }
  0x1b   :  { %161 = vmatpush.msra.mxu3 %v40_v50  ;;  %121 = vmatpush.msra.mxu1 %v38_v51  ;;  %v259_v10 = vld [vmem:[%s1312_s2 + $0x2d0] sm:$0xff]  ;;  %v193_v11 = vld [vmem:[%s1312_s2 + $0xc0] sm:$0xff] }
  0x1c   :  { %102 = vmatpush.msra.mxu0 %v33_v52  ;;  %142 = vmatpush.msra.mxu2 %v35_v53  ;;  %v227_v12 = vld [vmem:[%s1312_s2 + $0x1d0] sm:$0xff]  ;;  %v257_v14 = vld [vmem:[%s1312_s2 + $0x2c0] sm:$0xff] }
  0x1d   :  { %162 = vmatpush.msra.mxu3 %v36_v54  ;;  %122 = vmatpush.msra.mxu1 %v34_v55  ;;  %v291_v13 = vld [vmem:[%s1312_s2 + $0x3d0] sm:$0xff]  ;;  %v225_v16 = vld [vmem:[%s1312_s2 + $0x1c0] sm:$0xff] }
  0x1e   :  { %103 = vmatpush.msra.mxu0 %v29_v56  ;;  %143 = vmatpush.msra.mxu2 %v31_v57  ;;  %v191_v15 = vld [vmem:[%s1312_s2 + $0xb0] sm:$0xff]  ;;  %v289_v17 = vld [vmem:[%s1312_s2 + $0x3c0] sm:$0xff] }
  0x1f   :  { %163 = vmatpush.msra.mxu3 %v32_v58  ;;  %123 = vmatpush.msra.mxu1 %v30_v59  ;;  %v255_v18 = vld [vmem:[%s1312_s2 + $0x2b0] sm:$0xff]  ;;  %v189_v19 = vld [vmem:[%s1312_s2 + $0xa0] sm:$0xff] }
  0x20   :  { %104 = vmatpush.msra.mxu0 %v25_v60  ;;  %144 = vmatpush.msra.mxu2 %v27_v61  ;;  %v223_v20 = vld [vmem:[%s1312_s2 + $0x1b0] sm:$0xff]  ;;  %v253_v22 = vld [vmem:[%s1312_s2 + $0x2a0] sm:$0xff] }
  0x21   :  { %164 = vmatpush.msra.mxu3 %v28_v62  ;;  %105 = vmatmul.f32.vlgmr.msra.gmra.mxu0 %v24_v63  ;;  %v287_v21 = vld [vmem:[%s1312_s2 + $0x3b0] sm:$0xff]  ;;  %v221_v24 = vld [vmem:[%s1312_s2 + $0x1a0] sm:$0xff] }
  0x22   :  { %145 = vmatmul.f32.vlgmr.msra.gmra.mxu2 %v24_v63  ;;  %165 = vmatmul.f32.vlgmr.msra.gmra.mxu3 %v24_v63  ;;  %v187_v23 = vld [vmem:[%s1312_s2 + $0x90] sm:$0xff]  ;;  %v285_v25 = vld [vmem:[%s1312_s2 + $0x3a0] sm:$0xff] }
  0x23   :  { %124 = vmatpush.msra.mxu1 %v26_v0  ;;  %303 = vmatpush.msrb.mxu0 %v199_v1  ;;  %v251_v26 = vld [vmem:[%s1312_s2 + $0x290] sm:$0xff]  ;;  %v185_v27 = vld [vmem:[%s1312_s2 + $0x80] sm:$0xff] }
  0x24   :  { %125 = vmatmul.f32.vlgmr.msra.gmra.mxu1 %v24_v63  ;;  %343 = vmatpush.msrb.mxu2 %v263_v2  ;;  %v219_v28 = vld [vmem:[%s1312_s2 + $0x190] sm:$0xff]  ;;  %v249_v30 = vld [vmem:[%s1312_s2 + $0x280] sm:$0xff] }
  0x25   :  { %304 = vmatpush.msrb.mxu0 %v197_v3  ;;  %323 = vmatpush.msrb.mxu1 %v231_v4  ;;  %v283_v29 = vld [vmem:[%s1312_s2 + $0x390] sm:$0xff]  ;;  %v217_v32 = vld [vmem:[%s1312_s2 + $0x180] sm:$0xff] }
  0x26   :  { %363 = vmatpush.msrb.mxu3 %v295_v5  ;;  %344 = vmatpush.msrb.mxu2 %v261_v6  ;;  %v183_v31 = vld [vmem:[%s1312_s2 + $0x70] sm:$0xff]  ;;  %v281_v33 = vld [vmem:[%s1312_s2 + $0x380] sm:$0xff] }
  0x27   :  { %305 = vmatpush.msrb.mxu0 %v195_v7  ;;  %324 = vmatpush.msrb.mxu1 %v229_v8  ;;  %v247_v34 = vld [vmem:[%s1312_s2 + $0x270] sm:$0xff]  ;;  %v181_v35 = vld [vmem:[%s1312_s2 + $0x60] sm:$0xff] }
  0x28   :  { %364 = vmatpush.msrb.mxu3 %v293_v9  ;;  %345 = vmatpush.msrb.mxu2 %v259_v10  ;;  %v215_v36 = vld [vmem:[%s1312_s2 + $0x170] sm:$0xff]  ;;  %v245_v38 = vld [vmem:[%s1312_s2 + $0x260] sm:$0xff] }
  0x29   :  { %306 = vmatpush.msrb.mxu0 %v193_v11  ;;  %325 = vmatpush.msrb.mxu1 %v227_v12  ;;  %v279_v37 = vld [vmem:[%s1312_s2 + $0x370] sm:$0xff]  ;;  %v213_v40 = vld [vmem:[%s1312_s2 + $0x160] sm:$0xff] }
  0x2a   :  { %365 = vmatpush.msrb.mxu3 %v291_v13  ;;  %346 = vmatpush.msrb.mxu2 %v257_v14  ;;  %v179_v39 = vld [vmem:[%s1312_s2 + $0x50] sm:$0xff]  ;;  %v277_v41 = vld [vmem:[%s1312_s2 + $0x360] sm:$0xff] }
  0x2b   :  { %307 = vmatpush.msrb.mxu0 %v191_v15  ;;  %326 = vmatpush.msrb.mxu1 %v225_v16  ;;  %v243_v42 = vld [vmem:[%s1312_s2 + $0x250] sm:$0xff]  ;;  %v177_v43 = vld [vmem:[%s1312_s2 + $0x40] sm:$0xff] }
  0x2c   :  { %366 = vmatpush.msrb.mxu3 %v289_v17  ;;  %347 = vmatpush.msrb.mxu2 %v255_v18  ;;  %v211_v44 = vld [vmem:[%s1312_s2 + $0x150] sm:$0xff]  ;;  %v241_v47 = vld [vmem:[%s1312_s2 + $0x240] sm:$0xff] }
  0x2d   :  { %308 = vmatpush.msrb.mxu0 %v189_v19  ;;  %327 = vmatpush.msrb.mxu1 %v223_v20  ;;  %v175_v45 = vld [vmem:[%s1312_s2 + $0x30] sm:$0xff]  ;;  %v209_v48 = vld [vmem:[%s1312_s2 + $0x140] sm:$0xff] }
  0x2e   :  { %367 = vmatpush.msrb.mxu3 %v287_v21  ;;  %348 = vmatpush.msrb.mxu2 %v253_v22  ;;  %v275_v46 = vld [vmem:[%s1312_s2 + $0x350] sm:$0xff] }
  0x2f   :  { %309 = vmatpush.msrb.mxu0 %v187_v23  ;;  %328 = vmatpush.msrb.mxu1 %v221_v24 }
  0x30   :  { %368 = vmatpush.msrb.mxu3 %v285_v25  ;;  %349 = vmatpush.msrb.mxu2 %v251_v26 }
  0x31   :  { %310 = vmatpush.msrb.mxu0 %v185_v27  ;;  %329 = vmatpush.msrb.mxu1 %v219_v28 }
  0x32   :  { %369 = vmatpush.msrb.mxu3 %v283_v29  ;;  %350 = vmatpush.msrb.mxu2 %v249_v30 }
  0x33   :  { %311 = vmatpush.msrb.mxu0 %v183_v31  ;;  %330 = vmatpush.msrb.mxu1 %v217_v32 }
  0x34   :  { %370 = vmatpush.msrb.mxu3 %v281_v33  ;;  %351 = vmatpush.msrb.mxu2 %v247_v34 }
  0x35   :  { %312 = vmatpush.msrb.mxu0 %v181_v35  ;;  %331 = vmatpush.msrb.mxu1 %v215_v36 }
  0x36   :  { %371 = vmatpush.msrb.mxu3 %v279_v37  ;;  %352 = vmatpush.msrb.mxu2 %v245_v38 }
  0x37   :  { %313 = vmatpush.msrb.mxu0 %v179_v39  ;;  %332 = vmatpush.msrb.mxu1 %v213_v40 }
  0x38   :  { %372 = vmatpush.msrb.mxu3 %v277_v41  ;;  %353 = vmatpush.msrb.mxu2 %v243_v42 }
  0x39   :  { %11 = vsyncpa [#allocation3], 0  ;;  %314 = vmatpush.msrb.mxu0 %v177_v43  ;;  %333 = vmatpush.msrb.mxu1 %v211_v44  ;;  %v273_v49 = vld [vmem:[%s1312_s2 + $0x340] sm:$0xff]  ;;  %v239_v50 = vld [vmem:[%s1312_s2 + $0x230] sm:$0xff]  ;;  %s590_s13 = smov [#allocation2]   ;;  %s553_s16 = sshll.u32 %s1316_s6, 4  ;;  %s554_s16 = int_to_ptr.hbm [resolvable:$true] %s553_s16 }
  0x3a   :  { %v173_v51 = vld [vmem:[%s1312_s2 + $0x20] sm:$0xff]  ;;  %v207_v52 = vld [vmem:[%s1312_s2 + $0x130] sm:$0xff]  ;;  %373 = vmatpush.msrb.mxu3 %v275_v46  ;;  %354 = vmatpush.msrb.mxu2 %v241_v47  ;;  %v200_v61 = vld [vmem:[%s1312_s2 + $0xf8] sm:$0xff]  ;;  %s551_s1 = sshll.u32 %s590_s13, 4  ;;  %s552_s1 = int_to_ptr.vmem [resolvable:$true] %s551_s1 }
  0x3b   :  { %315 = vmatpush.msrb.mxu0 %v175_v45  ;;  %334 = vmatpush.msrb.mxu1 %v209_v48  ;;  %v271_v53 = vld [vmem:[%s1312_s2 + $0x330] sm:$0xff]  ;;  %v237_v54 = vld [vmem:[%s1312_s2 + $0x220] sm:$0xff]  ;;  %v198_v1 = vld [vmem:[%s1312_s2 + $0xe8] sm:$0xff] }
  0x3c   :  { %v171_v55 = vld [vmem:[%s1312_s2 + $0x10] sm:$0xff]  ;;  %v205_v56 = vld [vmem:[%s1312_s2 + $0x120] sm:$0xff]  ;;  %374 = vmatpush.msrb.mxu3 %v273_v49  ;;  %355 = vmatpush.msrb.mxu2 %v239_v50  ;;  %v232_v2 = vld [vmem:[%s1312_s2 + $0x1f8] sm:$0xff] }
  0x3d   :  { %316 = vmatpush.msrb.mxu0 %v173_v51  ;;  %335 = vmatpush.msrb.mxu1 %v207_v52  ;;  %v269_v57 = vld [vmem:[%s1312_s2 + $0x320] sm:$0xff]  ;;  %v235_v58 = vld [vmem:[%s1312_s2 + $0x210] sm:$0xff]  ;;  %v264_v4 = vld [vmem:[%s1312_s2 + $0x2f8] sm:$0xff] }
  0x3e   :  { %v169_v59 = vld [vmem:[%s1312_s2] sm:$0xff]  ;;  %v203_v60 = vld [vmem:[%s1312_s2 + $0x110] sm:$0xff]  ;;  %375 = vmatpush.msrb.mxu3 %v271_v53  ;;  %356 = vmatpush.msrb.mxu2 %v237_v54  ;;  %v196_v5 = vld [vmem:[%s1312_s2 + $0xd8] sm:$0xff] }
  0x3f   :  { %317 = vmatpush.msrb.mxu0 %v171_v55  ;;  %336 = vmatpush.msrb.mxu1 %v205_v56  ;;  %v267_v62 = vld [vmem:[%s1312_s2 + $0x310] sm:$0xff]  ;;  %v201_v63 = vld [vmem:[%s1312_s2 + $0x100] sm:$0xff]  ;;  %v230_v6 = vld [vmem:[%s1312_s2 + $0x1e8] sm:$0xff] }
  0x40   :  { %376 = vmatpush.msrb.mxu3 %v269_v57  ;;  %357 = vmatpush.msrb.mxu2 %v235_v58  ;;  %v233_v0 = vld [vmem:[%s1312_s2 + $0x200] sm:$0xff]  ;;  %v296_v7 = vld [vmem:[%s1312_s2 + $0x3f8] sm:$0xff]  ;;  %v262_v8 = vld [vmem:[%s1312_s2 + $0x2e8] sm:$0xff] }
  0x41   :  { %318 = vmatpush.msrb.mxu0 %v169_v59  ;;  %337 = vmatpush.msrb.mxu1 %v203_v60  ;;  %v265_v3 = vld [vmem:[%s1312_s2 + $0x300] sm:$0xff]  ;;  %v194_v9 = vld [vmem:[%s1312_s2 + $0xc8] sm:$0xff]  ;;  %v228_v10 = vld [vmem:[%s1312_s2 + $0x1d8] sm:$0xff] }
  0x42   :  { %377 = vmatpush.msrb.mxu3 %v267_v62  ;;  %358 = vmatpush.msrb.mxu2 %v233_v0  ;;  %v294_v11 = vld [vmem:[%s1312_s2 + $0x3e8] sm:$0xff]  ;;  %v260_v12 = vld [vmem:[%s1312_s2 + $0x2d8] sm:$0xff] }
  0x43   :  { %383 = vmatpush.msra.mxu0 %v200_v61  ;;  %338 = vmatpush.msrb.mxu1 %v201_v63  ;;  %v192_v13 = vld [vmem:[%s1312_s2 + $0xb8] sm:$0xff]  ;;  %v226_v14 = vld [vmem:[%s1312_s2 + $0x1c8] sm:$0xff] }
  0x44   :  { %378 = vmatpush.msrb.mxu3 %v265_v3  ;;  %423 = vmatpush.msra.mxu2 %v264_v4  ;;  %v292_v15 = vld [vmem:[%s1312_s2 + $0x3d8] sm:$0xff]  ;;  %v258_v16 = vld [vmem:[%s1312_s2 + $0x2c8] sm:$0xff]  ;;  %v483_v3 = vld [vmem:[%s1314_s4 + $0x70] sm:$0xff] }
  0x45   :  { %384 = vmatpush.msra.mxu0 %v198_v1  ;;  %403 = vmatpush.msra.mxu1 %v232_v2  ;;  %v190_v17 = vld [vmem:[%s1312_s2 + $0xa8] sm:$0xff]  ;;  %v224_v18 = vld [vmem:[%s1312_s2 + $0x1b8] sm:$0xff] }
  0x46   :  { %443 = vmatpush.msra.mxu3 %v296_v7  ;;  %424 = vmatpush.msra.mxu2 %v262_v8  ;;  %v290_v19 = vld [vmem:[%s1312_s2 + $0x3c8] sm:$0xff]  ;;  %v256_v20 = vld [vmem:[%s1312_s2 + $0x2b8] sm:$0xff]  ;;  %v499_v7 = vld [vmem:[%s1314_s4 + $0xf0] sm:$0xff] }
  0x47   :  { %385 = vmatpush.msra.mxu0 %v196_v5  ;;  %404 = vmatpush.msra.mxu1 %v230_v6  ;;  %v188_v21 = vld [vmem:[%s1312_s2 + $0x98] sm:$0xff]  ;;  %v222_v22 = vld [vmem:[%s1312_s2 + $0x1a8] sm:$0xff] }
  0x48   :  { %444 = vmatpush.msra.mxu3 %v294_v11  ;;  %425 = vmatpush.msra.mxu2 %v260_v12  ;;  %v288_v23 = vld [vmem:[%s1312_s2 + $0x3b8] sm:$0xff]  ;;  %v254_v24 = vld [vmem:[%s1312_s2 + $0x2a8] sm:$0xff]  ;;  %v479_v12 = vld [vmem:[%s1314_s4 + $0x50] sm:$0xff] }
  0x49   :  { %386 = vmatpush.msra.mxu0 %v194_v9  ;;  %405 = vmatpush.msra.mxu1 %v228_v10  ;;  %v186_v25 = vld [vmem:[%s1312_s2 + $0x88] sm:$0xff]  ;;  %v220_v26 = vld [vmem:[%s1312_s2 + $0x198] sm:$0xff]  ;;  %v481_v10 = vld [vmem:[%s1314_s4 + $0x60] sm:$0xff] }
  0x4a   :  { %445 = vmatpush.msra.mxu3 %v292_v15  ;;  %426 = vmatpush.msra.mxu2 %v258_v16  ;;  %v286_v27 = vld [vmem:[%s1312_s2 + $0x3a8] sm:$0xff]  ;;  %v252_v28 = vld [vmem:[%s1312_s2 + $0x298] sm:$0xff]  ;;  %v477_v15 = vld [vmem:[%s1314_s4 + $0x40] sm:$0xff] }
  0x4b   :  { %387 = vmatpush.msra.mxu0 %v192_v13  ;;  %406 = vmatpush.msra.mxu1 %v226_v14  ;;  %v184_v29 = vld [vmem:[%s1312_s2 + $0x78] sm:$0xff]  ;;  %v218_v30 = vld [vmem:[%s1312_s2 + $0x188] sm:$0xff]  ;;  %v497_v16 = vld [vmem:[%s1314_s4 + $0xe0] sm:$0xff] }
  0x4c   :  { %446 = vmatpush.msra.mxu3 %v290_v19  ;;  %427 = vmatpush.msra.mxu2 %v256_v20  ;;  %v284_v31 = vld [vmem:[%s1312_s2 + $0x398] sm:$0xff]  ;;  %v250_v32 = vld [vmem:[%s1312_s2 + $0x288] sm:$0xff]  ;;  %v475_v19 = vld [vmem:[%s1314_s4 + $0x30] sm:$0xff] }
  0x4d   :  { %388 = vmatpush.msra.mxu0 %v190_v17  ;;  %407 = vmatpush.msra.mxu1 %v224_v18  ;;  %v182_v33 = vld [vmem:[%s1312_s2 + $0x68] sm:$0xff]  ;;  %v216_v34 = vld [vmem:[%s1312_s2 + $0x178] sm:$0xff]  ;;  %v495_v20 = vld [vmem:[%s1314_s4 + $0xd0] sm:$0xff] }
  0x4e   :  { %447 = vmatpush.msra.mxu3 %v288_v23  ;;  %428 = vmatpush.msra.mxu2 %v254_v24  ;;  %v282_v35 = vld [vmem:[%s1312_s2 + $0x388] sm:$0xff]  ;;  %v180_v36 = vld [vmem:[%s1312_s2 + $0x58] sm:$0xff]  ;;  %v473_v23 = vld [vmem:[%s1314_s4 + $0x20] sm:$0xff] }
  0x4f   :  { %389 = vmatpush.msra.mxu0 %v188_v21  ;;  %408 = vmatpush.msra.mxu1 %v222_v22  ;;  %v214_v37 = vld [vmem:[%s1312_s2 + $0x168] sm:$0xff]  ;;  %v212_v39 = vld [vmem:[%s1312_s2 + $0x158] sm:$0xff]  ;;  %v493_v24 = vld [vmem:[%s1314_s4 + $0xc0] sm:$0xff] }
  0x50   :  { %448 = vmatpush.msra.mxu3 %v286_v27  ;;  %429 = vmatpush.msra.mxu2 %v252_v28  ;;  %v178_v38 = vld [vmem:[%s1312_s2 + $0x48] sm:$0xff]  ;;  %v248_v40 = vld [vmem:[%s1312_s2 + $0x278] sm:$0xff]  ;;  %v471_v27 = vld [vmem:[%s1314_s4 + $0x10] sm:$0xff] }
  0x51   :  { %390 = vmatpush.msra.mxu0 %v186_v25  ;;  %409 = vmatpush.msra.mxu1 %v220_v26  ;;  %v280_v41 = vld [vmem:[%s1312_s2 + $0x378] sm:$0xff]  ;;  %v210_v43 = vld [vmem:[%s1312_s2 + $0x148] sm:$0xff]  ;;  %v491_v28 = vld [vmem:[%s1314_s4 + $0xb0] sm:$0xff] }
  0x52   :  { %449 = vmatpush.msra.mxu3 %v284_v31  ;;  %430 = vmatpush.msra.mxu2 %v250_v32  ;;  %v176_v42 = vld [vmem:[%s1312_s2 + $0x38] sm:$0xff]  ;;  %v246_v44 = vld [vmem:[%s1312_s2 + $0x268] sm:$0xff]  ;;  %v469_v31 = vld [vmem:[%s1314_s4] sm:$0xff] }
  0x53   :  { %391 = vmatpush.msra.mxu0 %v184_v29  ;;  %410 = vmatpush.msra.mxu1 %v218_v30  ;;  %v278_v45 = vld [vmem:[%s1312_s2 + $0x368] sm:$0xff]  ;;  %v208_v47 = vld [vmem:[%s1312_s2 + $0x138] sm:$0xff]  ;;  %v489_v32 = vld [vmem:[%s1314_s4 + $0xa0] sm:$0xff] }
  0x54   :  { %450 = vmatpush.msra.mxu3 %v282_v35  ;;  %431 = vmatpush.msra.mxu2 %v248_v40  ;;  %v174_v46 = vld [vmem:[%s1312_s2 + $0x28] sm:$0xff]  ;;  %v244_v48 = vld [vmem:[%s1312_s2 + $0x258] sm:$0xff] }
  0x55   :  { %392 = vmatpush.msra.mxu0 %v182_v33  ;;  %411 = vmatpush.msra.mxu1 %v216_v34  ;;  %v276_v49 = vld [vmem:[%s1312_s2 + $0x358] sm:$0xff]  ;;  %v206_v51 = vld [vmem:[%s1312_s2 + $0x128] sm:$0xff]  ;;  %v487_v34 = vld [vmem:[%s1314_s4 + $0x90] sm:$0xff] }
  0x56   :  { %451 = vmatpush.msra.mxu3 %v280_v41  ;;  %432 = vmatpush.msra.mxu2 %v246_v44  ;;  %v172_v50 = vld [vmem:[%s1312_s2 + $0x18] sm:$0xff]  ;;  %v242_v52 = vld [vmem:[%s1312_s2 + $0x248] sm:$0xff] }
  0x57   :  { %393 = vmatpush.msra.mxu0 %v180_v36  ;;  %412 = vmatpush.msra.mxu1 %v214_v37  ;;  %v274_v53 = vld [vmem:[%s1312_s2 + $0x348] sm:$0xff]  ;;  %v204_v55 = vld [vmem:[%s1312_s2 + $0x118] sm:$0xff]  ;;  %v485_v36 = vld [vmem:[%s1314_s4 + $0x80] sm:$0xff] }
  0x58   :  { %452 = vmatpush.msra.mxu3 %v278_v45  ;;  %433 = vmatpush.msra.mxu2 %v244_v48  ;;  %v170_v54 = vld [vmem:[%s1312_s2 + $0x8] sm:$0xff]  ;;  %v240_v56 = vld [vmem:[%s1312_s2 + $0x238] sm:$0xff]  ;;  %v297_v37 = vld [vmem:[%s1313_s3] sm:$0x3] }
  0x59   :  { %394 = vmatpush.msra.mxu0 %v178_v38  ;;  %413 = vmatpush.msra.mxu1 %v212_v39  ;;  %v272_v57 = vld [vmem:[%s1312_s2 + $0x338] sm:$0xff]  ;;  %v202_v58 = vld [vmem:[%s1312_s2 + $0x108] sm:$0xff]  ;;  %v299_v38 = vperm.slane %v297_v37, 0 }
  0x5a   :  { %453 = vmatpush.msra.mxu3 %v276_v49  ;;  %434 = vmatpush.msra.mxu2 %v242_v52  ;;  %v238_v59 = vld [vmem:[%s1312_s2 + $0x228] sm:$0xff]  ;;  %v236_v61 = vld [vmem:[%s1312_s2 + $0x218] sm:$0xff] }
  0x5b   :  { %395 = vmatpush.msra.mxu0 %v176_v42  ;;  %414 = vmatpush.msra.mxu1 %v210_v43  ;;  %v270_v60 = vld [vmem:[%s1312_s2 + $0x328] sm:$0xff]  ;;  %v268_v62 = vld [vmem:[%s1312_s2 + $0x318] sm:$0xff]  ;;  %v300_v43 = vperm.slane %v297_v37, 1 }
  0x5c   :  { %454 = vmatpush.msra.mxu3 %v274_v53  ;;  %435 = vmatpush.msra.mxu2 %v240_v56  ;;  %v234_v63 = vld [vmem:[%s1312_s2 + $0x208] sm:$0xff]  ;;  %v484_v1 = vld [vmem:[%s1314_s4 + $0x78] sm:$0xff] }
  0x5d   :  { %396 = vmatpush.msra.mxu0 %v174_v46  ;;  %415 = vmatpush.msra.mxu1 %v208_v47  ;;  %v266_v0 = vld [vmem:[%s1312_s2 + $0x308] sm:$0xff]  ;;  %v500_v4 = vld [vmem:[%s1314_s4 + $0xf8] sm:$0xff] }
  0x5e   :  { %455 = vmatpush.msra.mxu3 %v272_v57  ;;  %436 = vmatpush.msra.mxu2 %v238_v59  ;;  %v482_v6 = vld [vmem:[%s1314_s4 + $0x68] sm:$0xff]  ;;  %v480_v11 = vld [vmem:[%s1314_s4 + $0x58] sm:$0xff] }
  0x5f   :  { %397 = vmatpush.msra.mxu0 %v172_v50  ;;  %416 = vmatpush.msra.mxu1 %v206_v51  ;;  %v478_v13 = vld [vmem:[%s1314_s4 + $0x48] sm:$0xff]  ;;  %v476_v17 = vld [vmem:[%s1314_s4 + $0x38] sm:$0xff] }
  0x60   :  { %456 = vmatpush.msra.mxu3 %v270_v60  ;;  %437 = vmatpush.msra.mxu2 %v236_v61  ;;  %v498_v14 = vld [vmem:[%s1314_s4 + $0xe8] sm:$0xff]  ;;  %v496_v18 = vld [vmem:[%s1314_s4 + $0xd8] sm:$0xff]  ;;  %v563_v60 = vld [vmem:[%s1315_s5] ss:$0 sm:$0xff] }
  0x61   :  { %398 = vmatpush.msra.mxu0 %v170_v54  ;;  %417 = vmatpush.msra.mxu1 %v204_v55  ;;  %v474_v21 = vld [vmem:[%s1314_s4 + $0x28] sm:$0xff]  ;;  %v472_v25 = vld [vmem:[%s1314_s4 + $0x18] sm:$0xff] }
  0x62   :  { %457 = vmatpush.msra.mxu3 %v268_v62  ;;  %438 = vmatpush.msra.mxu2 %v234_v63  ;;  %v494_v22 = vld [vmem:[%s1314_s4 + $0xc8] sm:$0xff]  ;;  %v492_v26 = vld [vmem:[%s1314_s4 + $0xb8] sm:$0xff] }
  0x63   :  { %418 = vmatpush.msra.mxu1 %v202_v58  ;;  %v470_v29 = vld [vmem:[%s1314_s4 + $0x8] sm:$0xff]  ;;  %v488_v33 = vld [vmem:[%s1314_s4 + $0x98] sm:$0xff] }
  0x64   :  { %458 = vmatpush.msra.mxu3 %v266_v0  ;;  %v490_v30 = vld [vmem:[%s1314_s4 + $0xa8] sm:$0xff] }
  0x65   :  { %v486_v35 = vld [vmem:[%s1314_s4 + $0x88] sm:$0xff] }
  0x9e   :  { %v106_v2 = vpop.f32.mrf.mxu0 }
  0x9f   :  { %319 = vmatmul.f32.vlgmr.msrb.gmra.mxu0 %v106_v2 }
  0xa0   :  { %505 = vmatpush.msrb.mxu0 %v484_v1 }
  0xa1   :  { %v126_v5 = vpop.f32.mrf.mxu1 }
  0xa2   :  { %339 = vmatmul.f32.vlgmr.msrb.gmra.mxu1 %v126_v5  ;;  %506 = vmatpush.msrb.mxu0 %v483_v3 }
  0xa3   :  { %525 = vmatpush.msrb.mxu1 %v500_v4 }
  0xa4   :  { %507 = vmatpush.msrb.mxu0 %v482_v6 }
  0xa5   :  { %v146_v8 = vpop.f32.mrf.mxu2  ;;  %v166_v9 = vpop.f32.mrf.mxu3  ;;  %526 = vmatpush.msrb.mxu1 %v499_v7 }
  0xa6   :  { %359 = vmatmul.f32.vlgmr.msrb.gmra.mxu2 %v146_v8  ;;  %379 = vmatmul.f32.vlgmr.msrb.gmra.mxu3 %v166_v9 }
  0xa7   :  { %399 = vmatmul.f32.vlgmr.msra.gmra.mxu0 %v106_v2  ;;  %527 = vmatpush.msrb.mxu1 %v498_v14 }
  0xa8   :  { %508 = vmatpush.msrb.mxu0 %v481_v10 }
  0xa9   :  { %528 = vmatpush.msrb.mxu1 %v497_v16 }
  0xaa   :  { %419 = vmatmul.f32.vlgmr.msra.gmra.mxu1 %v126_v5  ;;  %509 = vmatpush.msrb.mxu0 %v480_v11 }
  0xab   :  { %529 = vmatpush.msrb.mxu1 %v496_v18 }
  0xac   :  { %510 = vmatpush.msrb.mxu0 %v479_v12 }
  0xad   :  { %530 = vmatpush.msrb.mxu1 %v495_v20 }
  0xae   :  { %439 = vmatmul.f32.vlgmr.msra.gmra.mxu2 %v146_v8  ;;  %459 = vmatmul.f32.vlgmr.msra.gmra.mxu3 %v166_v9 }
  0xaf   :  { %511 = vmatpush.msrb.mxu0 %v478_v13  ;;  %531 = vmatpush.msrb.mxu1 %v494_v22 }
  0xb1   :  { %512 = vmatpush.msrb.mxu0 %v477_v15  ;;  %532 = vmatpush.msrb.mxu1 %v493_v24 }
  0xb3   :  { %513 = vmatpush.msrb.mxu0 %v476_v17  ;;  %533 = vmatpush.msrb.mxu1 %v492_v26 }
  0xb5   :  { %514 = vmatpush.msrb.mxu0 %v475_v19  ;;  %534 = vmatpush.msrb.mxu1 %v491_v28 }
  0xb7   :  { %515 = vmatpush.msrb.mxu0 %v474_v21  ;;  %535 = vmatpush.msrb.mxu1 %v490_v30 }
  0xb9   :  { %516 = vmatpush.msrb.mxu0 %v473_v23  ;;  %536 = vmatpush.msrb.mxu1 %v489_v32 }
  0xbb   :  { %517 = vmatpush.msrb.mxu0 %v472_v25  ;;  %537 = vmatpush.msrb.mxu1 %v488_v33 }
  0xbd   :  { %518 = vmatpush.msrb.mxu0 %v471_v27  ;;  %538 = vmatpush.msrb.mxu1 %v487_v34 }
  0xbf   :  { %519 = vmatpush.msrb.mxu0 %v470_v29  ;;  %539 = vmatpush.msrb.mxu1 %v486_v35 }
  0xc1   :  { %520 = vmatpush.msrb.mxu0 %v469_v31  ;;  %540 = vmatpush.msrb.mxu1 %v485_v36 }
 0x11c   :  { %v320_v39 = vpop.f32.mrf.mxu0 }
 0x11d   :  { %v321_v40 = vadd.f32 %v320_v39, %v299_v38 }
 0x11f   :  { %v340_v41 = vpop.f32.mrf.mxu1 }
 0x120   :  { %v341_v42 = vadd.f32 %v340_v41, %v321_v40 }
 0x124   :  { %v400_v44 = vpop.f32.mrf.mxu0 }
 0x125   :  { %v401_v48 = vadd.f32 %v400_v44, %v300_v43 }
 0x127   :  { %v420_v50 = vpop.f32.mrf.mxu1 }
 0x128   :  { %v421_v52 = vadd.f32 %v420_v50, %v401_v48 }
 0x129   :  { %v360_v45 = vpop.f32.mrf.mxu2  ;;  %v380_v46 = vpop.f32.mrf.mxu3 }
 0x12a   :  { %v361_v47 = vadd.f32 %v360_v45, %v341_v42 }
 0x12c   :  { %v381_v49 = vadd.f32 %v380_v46, %v361_v47 }
 0x12e   :  { %vm463_vm0 = vcmp.ge.f32.partialorder %v381_v49, 0.0  ;;  %v465_v51 = vmul.f32 0.1, %v381_v49 }
 0x130   :  { %v467_v53 = vsel %vm463_vm0, %v381_v49, %v465_v51 }
 0x131   :  { %v440_v54 = vpop.f32.mrf.mxu2  ;;  %521 = vmatmul.f32.vlgmr.msrb.gmra.mxu0 %v467_v53  ;;  %v460_v56 = vpop.f32.mrf.mxu3 }
 0x132   :  { %v441_v55 = vadd.f32 %v440_v54, %v421_v52 }
 0x134   :  { %v461_v57 = vadd.f32 %v460_v56, %v441_v55 }
 0x136   :  { %vm464_vm1 = vcmp.ge.f32.partialorder %v461_v57, 0.0  ;;  %v466_v58 = vmul.f32 0.1, %v461_v57 }
 0x138   :  { %v468_v59 = vsel %vm464_vm1, %v461_v57, %v466_v58 }
 0x139   :  { %541 = vmatmul.f32.vlgmr.msrb.gmra.mxu1 %v468_v59 }
 0x1ae   :  { %v522_v61 = vpop.f32.mrf.mxu0 }
 0x1af   :  { %v523_v62 = vadd.f32 %v563_v60, %v522_v61 }
 0x1b6   :  { %v542_v63 = vpop.f32.mrf.mxu1 }
 0x1b7   :  { %v543_v0 = vadd.f32 %v542_v63, %v523_v62 }
 0x1b9   :  { %545 = vst [vmem:[#allocation2] sm:$0x3] %v543_v0 }
 0x1ba   :  { %556 = dma.vmem_to_hbm [thread:$0]  %s552_s1, 32, %s554_s16, [#allocation3]  }
 0x1bb   :  { %588 = dma.done.wait [#allocation3], 32  }
 0x1bc   :  { %589 = vsyncadd [#allocation3], 4294967264 }
 0x1bd   :  { %561 = vsyncpa [#allocation3], 1 }

</bundles_post_ra>
